<compile_context>
chip_gen: v7x
topology: tpu7x:2x2x1
jax: 0.10.0
libtpu: 0.0.40
codegen_flags: <defaults>
</compile_context>

<pallas_src>
import jax
import jax.numpy as jnp
from jax.experimental import pallas as pl
from jax.experimental.pallas import tpu as pltpu

_ROW_ALIGN = 16  # sublane multiple that is layout-friendly for f32 and bf16 blocks


def _kl_loss_kernel(scalar_ref, x1_ref, x2_ref, t_ref, pt_ref, mo_ref, mt_ref, o_ref):
    """One row block: fused masked-BCE terms + symmetric KL, reduced to per-row means.

    scalar_ref (SMEM, f32[4]) = [margin, co_lambda, w2, w3] with
        w2 = BCEW if epoch >= generateLabelEpoch else 0.0
        w3 = 1.0  if epoch >= mixupepoch         else 0.0
    """
    margin = scalar_ref[0]
    co_lambda = scalar_ref[1]
    w2 = scalar_ref[2]
    w3 = scalar_ref[3]

    inv_c = 1.0 / x1_ref.shape[-1]  # block spans the full class dim

    x1 = x1_ref[...].astype(jnp.float32)

    def bce_rowsum(x, tgt, softplus_neg_abs_x):
        # Sign trick, matching PyTorch exactly (strict comparisons):
        #   s=+1: softplus(-|x|) - x*t + max( x,0) == BCEWithLogits( x,  t)
        #   s=-1: softplus(-|x|) - x*t + max(-x,0) == BCEWithLogits(-x, -t)
        #   s= 0: 0
        s = jnp.where(tgt > margin, 1.0, jnp.where(tgt < -margin, -1.0, 0.0))
        bce = jnp.abs(s) * (softplus_neg_abs_x - x * tgt) + jnp.maximum(s * x, 0.0)
        return jnp.sum(bce, axis=-1, keepdims=True)

    # softplus(-|x1|) is shared by bce(x1, target) and bce(x1, pseudotarget).
    # Each term collapses to a per-row sum immediately -> fewer live block temporaries.
    sp_x1 = jnp.log1p(jnp.exp(-jnp.abs(x1)))
    r1 = bce_rowsum(x1, t_ref[...].astype(jnp.float32), sp_x1)
    r2 = bce_rowsum(x1, pt_ref[...].astype(jnp.float32), sp_x1)

    mo = mo_ref[...].astype(jnp.float32)
    r3 = bce_rowsum(mo, mt_ref[...].astype(jnp.float32),
                    jnp.log1p(jnp.exp(-jnp.abs(mo))))

    def logp_p(x):
        # Block spans the full class dim, so the row reduction stays in-block.
        z = x - jnp.max(x, axis=-1, keepdims=True)
        e = jnp.exp(z)
        ssum = jnp.sum(e, axis=-1, keepdims=True)
        return z - jnp.log(ssum), e * (1.0 / ssum)

    x2 = x2_ref[...].astype(jnp.float32)
    logp1, p1 = logp_p(x1)
    logp2, p2 = logp_p(x2)
    # kl(1,2) + kl(2,1) = p2*(logp2-logp1) + p1*(logp1-logp2) = (p1-p2)*(logp1-logp2)
    rkl = jnp.sum((p1 - p2) * (logp1 - logp2), axis=-1, keepdims=True)

    # Epoch gates, co_lambda weighting and the dim=1 mean applied to per-row scalars only.
    o_ref[...] = ((r1 + w2 * r2 + w3 * r3) * (1.0 - co_lambda) + co_lambda * rkl) * inv_c


def _pick_block_rows(B, C):
    """Row tile: ~1 MiB f32 working block (fits v5e/v6e/v7x VMEM with 6 inputs x 2
    pipeline buffers + temporaries), split into >= ~8 grid blocks when B allows so
    v7x's two TensorCores both get work."""
    if B <= _ROW_ALIGN:
        return B  # single block equal to the full batch dim (always layout-legal)
    cap = max(_ROW_ALIGN, ((1 << 20) // (4 * C)) // _ROW_ALIGN * _ROW_ALIGN)
    split = max(_ROW_ALIGN, pl.cdiv(pl.cdiv(B, 8), _ROW_ALIGN) * _ROW_ALIGN)
    return min(cap, split)


def kl_loss_forward(input1, input2, target, mixupepoch, mixedoutput, mixedtarget,
                    pseudotarget, BCEW, epoch, generateLabelEpoch, forget_rate,
                    *, margin=0.0, co_lambda=0.1, block_rows=None):
    """Full KLLoss.forward. Returns (scalar loss, per-sample losses).

    Inputs may be f32, bf16, or (for targets) int8 — the kernel upcasts to f32."""
    B, C = input1.shape
    for a in (input2, target, pseudotarget, mixedoutput, mixedtarget):
        assert a.shape == (B, C)

    # Epoch gates (Python scalars, mirrors the module's `if epoch < ...` branches).
    w2 = float(BCEW) if epoch >= generateLabelEpoch else 0.0
    w3 = 1.0 if epoch >= mixupepoch else 0.0
    scalars = jnp.array([margin, co_lambda, w2, w3], dtype=jnp.float32)

    if block_rows is None:
        block_rows = _pick_block_rows(B, C)
    block_rows = min(block_rows, B)
    n_blocks = pl.cdiv(B, block_rows)  # ragged tail handled by Pallas (no jnp.pad copies)

    mat_spec = pl.BlockSpec((block_rows, C), lambda i, s: (i, 0))
    out_spec = pl.BlockSpec((block_rows, 1), lambda i, s: (i, 0))

    in_bytes = sum(int(a.size) * a.dtype.itemsize
                   for a in (input1, input2, target, pseudotarget, mixedoutput, mixedtarget))
    cost = pl.CostEstimate(flops=int(55 * B * C),
                           transcendentals=int(6 * B * C),
                           bytes_accessed=int(in_bytes + 4 * B))

    per_row = pl.pallas_call(
        _kl_loss_kernel,
        out_shape=jax.ShapeDtypeStruct((B, 1), jnp.float32),
        grid_spec=pltpu.PrefetchScalarGridSpec(
            num_scalar_prefetch=1,
            grid=(n_blocks,),
            in_specs=[mat_spec] * 6,
            out_specs=out_spec,
        ),
        compiler_params=pltpu.CompilerParams(
            dimension_semantics=("parallel",),
            vmem_limit_bytes=32 * 1024 * 1024,
        ),
        cost_estimate=cost,
    )(scalars, input1, input2, target, pseudotarget, mixedoutput, mixedtarget)

    per_sample = per_row[:, 0]

    # Small-loss selection (co-teaching): keep the (1 - forget_rate) fraction with the
    # smallest per-sample loss, then mean.  O(B) work, done with top_k instead of a sort.
    # TODO(synk): sorting/selection has no clean Pallas TPU primitive; done XLA-side.
    num_remember = int((1.0 - forget_rate) * B)  # NOTE: ==0 gives NaN, same as torch.mean([])
    neg_smallest, _ = jax.lax.top_k(-per_sample, num_remember)
    loss = jnp.mean(-neg_smallest)
    return loss, per_sample


def _reference_forward(input1, input2, target, mixupepoch, mixedoutput, mixedtarget,
                       pseudotarget, BCEW, epoch, generateLabelEpoch, forget_rate,
                       margin=0.0, co_lambda=0.1):
    def bce(x, t):
        sp = jnp.log1p(jnp.exp(-jnp.abs(x)))
        pos = jnp.maximum(x, 0.0) - x * t + sp        # BCEWithLogits(x, t)
        neg = jnp.maximum(-x, 0.0) - x * t + sp       # BCEWithLogits(-x, -t)
        return jnp.where(t > margin, pos, 0.0) + jnp.where(t < -margin, neg, 0.0)

    lp1 = bce(input1, target)
    lp2 = (0.0 * bce(input1, pseudotarget) if epoch < generateLabelEpoch
           else BCEW * bce(input1, pseudotarget))
    lp3 = 0.0 * lp1 if epoch < mixupepoch else bce(mixedoutput, mixedtarget)

    logp1 = jax.nn.log_softmax(input1, axis=1)
    logp2 = jax.nn.log_softmax(input2, axis=1)
    p1, p2 = jnp.exp(logp1), jnp.exp(logp2)
    kl12 = p2 * (logp2 - logp1)
    kl21 = p1 * (logp1 - logp2)

    loss_pick = (lp1 + lp2 + lp3) * (1.0 - co_lambda) + co_lambda * kl12 + co_lambda * kl21
    per_sample = jnp.mean(loss_pick, axis=1)
    num_remember = int((1.0 - forget_rate) * per_sample.shape[0])
    loss = jnp.mean(jnp.sort(per_sample)[:num_remember])
    return loss, per_sample


if __name__ == "__main__":
    key = jax.random.PRNGKey(0)
    ks = jax.random.split(key, 6)

    # Small multi-label classification shape; B=24 with 16-row blocks exercises the
    # pad-free ragged tail block, and bf16 inputs exercise the narrow-dtype read path.
    B, C = 24, 128
    input1 = jax.random.normal(ks[0], (B, C), dtype=jnp.float32).astype(jnp.bfloat16)
    input2 = jax.random.normal(ks[1], (B, C), dtype=jnp.float32).astype(jnp.bfloat16)
    target = jax.random.randint(ks[2], (B, C), -1, 2).astype(jnp.bfloat16)        # {-1,0,1}
    pseudotarget = jax.random.randint(ks[3], (B, C), -1, 2).astype(jnp.bfloat16)  # {-1,0,1}
    mixedoutput = jax.random.normal(ks[4], (B, C), dtype=jnp.float32).astype(jnp.bfloat16)
    mixedtarget = jax.random.uniform(ks[5], (B, C), dtype=jnp.float32,
                                     minval=-1.0, maxval=1.0).astype(jnp.bfloat16)

    mixupepoch, generateLabelEpoch, epoch = 5, 8, 10  # both extra BCE terms active
    BCEW = 0.5
    forget_rate = 0.25

    loss, per_sample = kl_loss_forward(
        input1, input2, target, mixupepoch, mixedoutput, mixedtarget,
        pseudotarget, BCEW, epoch, generateLabelEpoch, forget_rate,
        margin=0.0, co_lambda=0.1)
    loss = jax.block_until_ready(loss)

    # Reference on the exact same (bf16-rounded) values, computed in f32.
    f32 = lambda a: a.astype(jnp.float32)
    ref_loss, ref_per_sample = _reference_forward(
        f32(input1), f32(input2), f32(target), mixupepoch, f32(mixedoutput),
        f32(mixedtarget), f32(pseudotarget), BCEW, epoch, generateLabelEpoch,
        forget_rate, margin=0.0, co_lambda=0.1)

    assert per_sample.shape == (B,)
    assert jnp.allclose(per_sample, ref_per_sample, atol=3e-5, rtol=1e-4), "per-sample mismatch"
    assert jnp.allclose(loss, ref_loss, atol=3e-5, rtol=1e-4), "scalar loss mismatch"

    print("KERNEL_OK")
</pallas_src>

<mosaic_0001>
module attributes {stable_mosaic.version = 11 : i64} {
  func.func @_kl_loss_kernel(%arg0: i32, %arg1: memref<4xf32, #tpu.memory_space<smem>>, %arg2: memref<16x128xbf16, #tpu.memory_space<vmem>>, %arg3: memref<16x128xbf16, #tpu.memory_space<vmem>>, %arg4: memref<16x128xbf16, #tpu.memory_space<vmem>>, %arg5: memref<16x128xbf16, #tpu.memory_space<vmem>>, %arg6: memref<16x128xbf16, #tpu.memory_space<vmem>>, %arg7: memref<16x128xbf16, #tpu.memory_space<vmem>>, %arg8: memref<16x1xf32, #tpu.memory_space<vmem>>) attributes {dimension_semantics = [#tpu.dimension_semantics<parallel>], iteration_bounds = array<i64: 2>, scalar_prefetch = 1 : i64, scratch_operands = 0 : i64, tpu.core_type = #tpu.core_type<tc>, window_params = [{transform_indices = @transform_0, window_bounds = array<i64: 16, 128>}, {transform_indices = @transform_1, window_bounds = array<i64: 16, 128>}, {transform_indices = @transform_2, window_bounds = array<i64: 16, 128>}, {transform_indices = @transform_3, window_bounds = array<i64: 16, 128>}, {transform_indices = @transform_4, window_bounds = array<i64: 16, 128>}, {transform_indices = @transform_5, window_bounds = array<i64: 16, 128>}, {transform_indices = @transform_6, window_bounds = array<i64: 16, 1>}]} {
    %c0 = arith.constant 0 : index
    %0 = memref.load %arg1[%c0] : memref<4xf32, #tpu.memory_space<smem>>
    %c1 = arith.constant 1 : index
    %1 = memref.load %arg1[%c1] : memref<4xf32, #tpu.memory_space<smem>>
    %c2 = arith.constant 2 : index
    %2 = memref.load %arg1[%c2] : memref<4xf32, #tpu.memory_space<smem>>
    %c3 = arith.constant 3 : index
    %3 = memref.load %arg1[%c3] : memref<4xf32, #tpu.memory_space<smem>>
    %c0_0 = arith.constant 0 : index
    %c0_1 = arith.constant 0 : index
    %4 = vector.load %arg2[%c0_0, %c0_1] : memref<16x128xbf16, #tpu.memory_space<vmem>>, vector<16x128xbf16>
    %5 = arith.extf %4 : vector<16x128xbf16> to vector<16x128xf32>
    %6 = math.absf %5 : vector<16x128xf32>
    %cst = arith.constant 0.000000e+00 : f32
    %7 = vector.broadcast %cst : f32 to vector<16x128xf32>
    %8 = arith.subf %7, %6 : vector<16x128xf32>
    %9 = math.exp %8 : vector<16x128xf32>
    %10 = math.log1p %9 : vector<16x128xf32>
    %c0_2 = arith.constant 0 : index
    %c0_3 = arith.constant 0 : index
    %11 = vector.load %arg4[%c0_2, %c0_3] : memref<16x128xbf16, #tpu.memory_space<vmem>>, vector<16x128xbf16>
    %12 = arith.extf %11 : vector<16x128xbf16> to vector<16x128xf32>
    %13 = vector.broadcast %0 : f32 to vector<16x128xf32>
    %14 = arith.cmpf ogt, %12, %13 : vector<16x128xf32>
    %cst_4 = arith.constant 0.000000e+00 : f32
    %15 = arith.subf %cst_4, %0 : f32
    %16 = vector.broadcast %15 : f32 to vector<16x128xf32>
    %17 = arith.cmpf olt, %12, %16 : vector<16x128xf32>
    %cst_5 = arith.constant -1.000000e+00 : f32
    %cst_6 = arith.constant 0.000000e+00 : f32
    %18 = vector.broadcast %cst_5 : f32 to vector<16x128xf32>
    %19 = vector.broadcast %cst_6 : f32 to vector<16x128xf32>
    %20 = arith.select %17, %18, %19 : vector<16x128xi1>, vector<16x128xf32>
    %cst_7 = arith.constant 1.000000e+00 : f32
    %21 = vector.broadcast %cst_7 : f32 to vector<16x128xf32>
    %22 = arith.select %14, %21, %20 : vector<16x128xi1>, vector<16x128xf32>
    %23 = math.absf %22 : vector<16x128xf32>
    %24 = arith.mulf %5, %12 : vector<16x128xf32>
    %25 = arith.subf %10, %24 : vector<16x128xf32>
    %26 = arith.mulf %23, %25 : vector<16x128xf32>
    %27 = arith.mulf %22, %5 : vector<16x128xf32>
    %cst_8 = arith.constant 0.000000e+00 : f32
    %28 = vector.broadcast %cst_8 : f32 to vector<16x128xf32>
    %29 = arith.maximumf %27, %28 : vector<16x128xf32>
    %30 = arith.addf %26, %29 : vector<16x128xf32>
    %cst_9 = arith.constant dense<0.000000e+00> : vector<16xf32>
    %31 = vector.multi_reduction <add>, %30, %cst_9 [1] : vector<16x128xf32> to vector<16xf32>
    %32 = vector.shape_cast %31 : vector<16xf32> to vector<16x1xf32>
    %c0_10 = arith.constant 0 : index
    %c0_11 = arith.constant 0 : index
    %33 = vector.load %arg5[%c0_10, %c0_11] : memref<16x128xbf16, #tpu.memory_space<vmem>>, vector<16x128xbf16>
    %34 = arith.extf %33 : vector<16x128xbf16> to vector<16x128xf32>
    %35 = vector.broadcast %0 : f32 to vector<16x128xf32>
    %36 = arith.cmpf ogt, %34, %35 : vector<16x128xf32>
    %cst_12 = arith.constant 0.000000e+00 : f32
    %37 = arith.subf %cst_12, %0 : f32
    %38 = vector.broadcast %37 : f32 to vector<16x128xf32>
    %39 = arith.cmpf olt, %34, %38 : vector<16x128xf32>
    %cst_13 = arith.constant -1.000000e+00 : f32
    %cst_14 = arith.constant 0.000000e+00 : f32
    %40 = vector.broadcast %cst_13 : f32 to vector<16x128xf32>
    %41 = vector.broadcast %cst_14 : f32 to vector<16x128xf32>
    %42 = arith.select %39, %40, %41 : vector<16x128xi1>, vector<16x128xf32>
    %cst_15 = arith.constant 1.000000e+00 : f32
    %43 = vector.broadcast %cst_15 : f32 to vector<16x128xf32>
    %44 = arith.select %36, %43, %42 : vector<16x128xi1>, vector<16x128xf32>
    %45 = math.absf %44 : vector<16x128xf32>
    %46 = arith.mulf %5, %34 : vector<16x128xf32>
    %47 = arith.subf %10, %46 : vector<16x128xf32>
    %48 = arith.mulf %45, %47 : vector<16x128xf32>
    %49 = arith.mulf %44, %5 : vector<16x128xf32>
    %cst_16 = arith.constant 0.000000e+00 : f32
    %50 = vector.broadcast %cst_16 : f32 to vector<16x128xf32>
    %51 = arith.maximumf %49, %50 : vector<16x128xf32>
    %52 = arith.addf %48, %51 : vector<16x128xf32>
    %cst_17 = arith.constant dense<0.000000e+00> : vector<16xf32>
    %53 = vector.multi_reduction <add>, %52, %cst_17 [1] : vector<16x128xf32> to vector<16xf32>
    %54 = vector.shape_cast %53 : vector<16xf32> to vector<16x1xf32>
    %c0_18 = arith.constant 0 : index
    %c0_19 = arith.constant 0 : index
    %55 = vector.load %arg6[%c0_18, %c0_19] : memref<16x128xbf16, #tpu.memory_space<vmem>>, vector<16x128xbf16>
    %56 = arith.extf %55 : vector<16x128xbf16> to vector<16x128xf32>
    %c0_20 = arith.constant 0 : index
    %c0_21 = arith.constant 0 : index
    %57 = vector.load %arg7[%c0_20, %c0_21] : memref<16x128xbf16, #tpu.memory_space<vmem>>, vector<16x128xbf16>
    %58 = arith.extf %57 : vector<16x128xbf16> to vector<16x128xf32>
    %59 = math.absf %56 : vector<16x128xf32>
    %cst_22 = arith.constant 0.000000e+00 : f32
    %60 = vector.broadcast %cst_22 : f32 to vector<16x128xf32>
    %61 = arith.subf %60, %59 : vector<16x128xf32>
    %62 = math.exp %61 : vector<16x128xf32>
    %63 = math.log1p %62 : vector<16x128xf32>
    %64 = vector.broadcast %0 : f32 to vector<16x128xf32>
    %65 = arith.cmpf ogt, %58, %64 : vector<16x128xf32>
    %cst_23 = arith.constant 0.000000e+00 : f32
    %66 = arith.subf %cst_23, %0 : f32
    %67 = vector.broadcast %66 : f32 to vector<16x128xf32>
    %68 = arith.cmpf olt, %58, %67 : vector<16x128xf32>
    %cst_24 = arith.constant -1.000000e+00 : f32
    %cst_25 = arith.constant 0.000000e+00 : f32
    %69 = vector.broadcast %cst_24 : f32 to vector<16x128xf32>
    %70 = vector.broadcast %cst_25 : f32 to vector<16x128xf32>
    %71 = arith.select %68, %69, %70 : vector<16x128xi1>, vector<16x128xf32>
    %cst_26 = arith.constant 1.000000e+00 : f32
    %72 = vector.broadcast %cst_26 : f32 to vector<16x128xf32>
    %73 = arith.select %65, %72, %71 : vector<16x128xi1>, vector<16x128xf32>
    %74 = math.absf %73 : vector<16x128xf32>
    %75 = arith.mulf %56, %58 : vector<16x128xf32>
    %76 = arith.subf %63, %75 : vector<16x128xf32>
    %77 = arith.mulf %74, %76 : vector<16x128xf32>
    %78 = arith.mulf %73, %56 : vector<16x128xf32>
    %cst_27 = arith.constant 0.000000e+00 : f32
    %79 = vector.broadcast %cst_27 : f32 to vector<16x128xf32>
    %80 = arith.maximumf %78, %79 : vector<16x128xf32>
    %81 = arith.addf %77, %80 : vector<16x128xf32>
    %cst_28 = arith.constant dense<0.000000e+00> : vector<16xf32>
    %82 = vector.multi_reduction <add>, %81, %cst_28 [1] : vector<16x128xf32> to vector<16xf32>
    %83 = vector.shape_cast %82 : vector<16xf32> to vector<16x1xf32>
    %c0_29 = arith.constant 0 : index
    %c0_30 = arith.constant 0 : index
    %84 = vector.load %arg3[%c0_29, %c0_30] : memref<16x128xbf16, #tpu.memory_space<vmem>>, vector<16x128xbf16>
    %85 = arith.extf %84 : vector<16x128xbf16> to vector<16x128xf32>
    %cst_31 = arith.constant dense<0xFF800000> : vector<16xf32>
    %86 = vector.multi_reduction <maximumf>, %5, %cst_31 [1] : vector<16x128xf32> to vector<16xf32>
    %87 = vector.shape_cast %86 : vector<16xf32> to vector<16x1xf32>
    %88 = vector.broadcast %87 : vector<16x1xf32> to vector<16x128xf32>
    %89 = arith.subf %5, %88 : vector<16x128xf32>
    %90 = math.exp %89 : vector<16x128xf32>
    %cst_32 = arith.constant dense<0.000000e+00> : vector<16xf32>
    %91 = vector.multi_reduction <add>, %90, %cst_32 [1] : vector<16x128xf32> to vector<16xf32>
    %92 = vector.shape_cast %91 : vector<16xf32> to vector<16x1xf32>
    %93 = math.log %92 : vector<16x1xf32>
    %94 = vector.broadcast %93 : vector<16x1xf32> to vector<16x128xf32>
    %95 = arith.subf %89, %94 : vector<16x128xf32>
    %cst_33 = arith.constant 1.000000e+00 : f32
    %96 = vector.broadcast %cst_33 : f32 to vector<16x1xf32>
    %97 = arith.divf %96, %92 : vector<16x1xf32>
    %98 = vector.broadcast %97 : vector<16x1xf32> to vector<16x128xf32>
    %99 = arith.mulf %90, %98 : vector<16x128xf32>
    %cst_34 = arith.constant dense<0xFF800000> : vector<16xf32>
    %100 = vector.multi_reduction <maximumf>, %85, %cst_34 [1] : vector<16x128xf32> to vector<16xf32>
    %101 = vector.shape_cast %100 : vector<16xf32> to vector<16x1xf32>
    %102 = vector.broadcast %101 : vector<16x1xf32> to vector<16x128xf32>
    %103 = arith.subf %85, %102 : vector<16x128xf32>
    %104 = math.exp %103 : vector<16x128xf32>
    %cst_35 = arith.constant dense<0.000000e+00> : vector<16xf32>
    %105 = vector.multi_reduction <add>, %104, %cst_35 [1] : vector<16x128xf32> to vector<16xf32>
    %106 = vector.shape_cast %105 : vector<16xf32> to vector<16x1xf32>
    %107 = math.log %106 : vector<16x1xf32>
    %108 = vector.broadcast %107 : vector<16x1xf32> to vector<16x128xf32>
    %109 = arith.subf %103, %108 : vector<16x128xf32>
    %cst_36 = arith.constant 1.000000e+00 : f32
    %110 = vector.broadcast %cst_36 : f32 to vector<16x1xf32>
    %111 = arith.divf %110, %106 : vector<16x1xf32>
    %112 = vector.broadcast %111 : vector<16x1xf32> to vector<16x128xf32>
    %113 = arith.mulf %104, %112 : vector<16x128xf32>
    %114 = arith.subf %99, %113 : vector<16x128xf32>
    %115 = arith.subf %95, %109 : vector<16x128xf32>
    %116 = arith.mulf %114, %115 : vector<16x128xf32>
    %cst_37 = arith.constant dense<0.000000e+00> : vector<16xf32>
    %117 = vector.multi_reduction <add>, %116, %cst_37 [1] : vector<16x128xf32> to vector<16xf32>
    %118 = vector.shape_cast %117 : vector<16xf32> to vector<16x1xf32>
    %119 = vector.broadcast %2 : f32 to vector<16x1xf32>
    %120 = arith.mulf %119, %54 : vector<16x1xf32>
    %121 = arith.addf %32, %120 : vector<16x1xf32>
    %122 = vector.broadcast %3 : f32 to vector<16x1xf32>
    %123 = arith.mulf %122, %83 : vector<16x1xf32>
    %124 = arith.addf %121, %123 : vector<16x1xf32>
    %cst_38 = arith.constant 1.000000e+00 : f32
    %125 = arith.subf %cst_38, %1 : f32
    %126 = vector.broadcast %125 : f32 to vector<16x1xf32>
    %127 = arith.mulf %124, %126 : vector<16x1xf32>
    %128 = vector.broadcast %1 : f32 to vector<16x1xf32>
    %129 = arith.mulf %128, %118 : vector<16x1xf32>
    %130 = arith.addf %127, %129 : vector<16x1xf32>
    %cst_39 = arith.constant 7.812500e-03 : f32
    %131 = vector.broadcast %cst_39 : f32 to vector<16x1xf32>
    %132 = arith.mulf %130, %131 : vector<16x1xf32>
    %c0_40 = arith.constant 0 : index
    %c0_41 = arith.constant 0 : index
    %133 = vector.load %arg8[%c0_40, %c0_41] : memref<16x1xf32, #tpu.memory_space<vmem>>, vector<16x1xf32>
    tpu.vector_store %arg8[%c0_40, %c0_41], %132 {strides = array<i32>} : memref<16x1xf32, #tpu.memory_space<vmem>>, vector<16x1xf32>,
    return
  }
  func.func @transform_0(%arg0: i32, %arg1: memref<4xf32, #tpu.memory_space<smem>>) -> (i32, i32) {
    %c0_i32 = arith.constant 0 : i32
    %c0_i32_0 = arith.constant 0 : i32
    return %arg0, %c0_i32 : i32, i32
  }
  func.func @transform_1(%arg0: i32, %arg1: memref<4xf32, #tpu.memory_space<smem>>) -> (i32, i32) {
    %c0_i32 = arith.constant 0 : i32
    %c0_i32_0 = arith.constant 0 : i32
    return %arg0, %c0_i32 : i32, i32
  }
  func.func @transform_2(%arg0: i32, %arg1: memref<4xf32, #tpu.memory_space<smem>>) -> (i32, i32) {
    %c0_i32 = arith.constant 0 : i32
    %c0_i32_0 = arith.constant 0 : i32
    return %arg0, %c0_i32 : i32, i32
  }
  func.func @transform_3(%arg0: i32, %arg1: memref<4xf32, #tpu.memory_space<smem>>) -> (i32, i32) {
    %c0_i32 = arith.constant 0 : i32
    %c0_i32_0 = arith.constant 0 : i32
    return %arg0, %c0_i32 : i32, i32
  }
  func.func @transform_4(%arg0: i32, %arg1: memref<4xf32, #tpu.memory_space<smem>>) -> (i32, i32) {
    %c0_i32 = arith.constant 0 : i32
    %c0_i32_0 = arith.constant 0 : i32
    return %arg0, %c0_i32 : i32, i32
  }
  func.func @transform_5(%arg0: i32, %arg1: memref<4xf32, #tpu.memory_space<smem>>) -> (i32, i32) {
    %c0_i32 = arith.constant 0 : i32
    %c0_i32_0 = arith.constant 0 : i32
    return %arg0, %c0_i32 : i32, i32
  }
  func.func @transform_6(%arg0: i32, %arg1: memref<4xf32, #tpu.memory_space<smem>>) -> (i32, i32) {
    %c0_i32 = arith.constant 0 : i32
    %c0_i32_0 = arith.constant 0 : i32
    return %arg0, %c0_i32 : i32, i32
  }
}

</mosaic_0001>

<bundles_post_ra>
// kernel: tpu_custom_call.1
= control target key start
LH: loop header
LB: loop body
LE: loop exit
PB: predicated region body
PF: predicated region fallthrough
CT: control target
= control target key end

     0   :  { %s2144_s0 = inlined_call_operand.hbm [shape: f32[4], index: 0, kind: input, shape index: {}]   ;;  %s2145_s1 = inlined_call_operand.hbm [shape: bf16[24,128], index: 1, kind: input, shape index: {}]   ;;  %s2146_s2 = inlined_call_operand.hbm [shape: bf16[24,128], index: 2, kind: input, shape index: {}]   ;;  %s2147_s3 = inlined_call_operand.hbm [shape: bf16[24,128], index: 3, kind: input, shape index: {}]   ;;  %s2148_s4 = inlined_call_operand.vmem [shape: bf16[24,128], index: 4, kind: input, shape index: {}]   ;;  %s2149_s5 = inlined_call_operand.hbm [shape: bf16[24,128], index: 5, kind: input, shape index: {}]   ;;  %s2150_s6 = inlined_call_operand.hbm [shape: bf16[24,128], index: 6, kind: input, shape index: {}]   ;;  %s2151_s7 = inlined_call_operand.vmem [shape: f32[24,1], index: 7, kind: output, shape index: {}]  }
   0x1   :  { %s1354_s26 = scalar_lea.hbm %s2144_s0, 16 }
   0x2   :  { %p1355_p0 = scmp.ne.s32.totalorder %s2144_s0, %s1354_s26  ;;  %p1358_p1 = scmp.lt.u32.totalorder %s1354_s26, %s2144_s0 }
   0x4   :  { %p1360_p2 = pnand %p1358_p1, %p1355_p0 }
   0x6   :  { %1363 = shalt.err (!%p1360_p2)  }
   0x7   :  { %s1614_s8 = smov [#allocation3]  }
   0x8   :  { %13 = dma.hbm_to_smem %s2144_s0, 16, %s1614_s8, [#allocation2] }
   0x9   :  { %1552 = dma.done.wait [#allocation2], 16 }
   0xa   :  { %1553 = vsyncadd [#allocation2], 4294967280 }
   0xb   :  { %15 = sfence }
   0xc   :  { %16 = vsyncpa [#allocation5], 0 }
   0xd   :  { %18 = vsyncpa [#allocation5 + $0x1], 0 }
   0xe   :  { %19 = vsyncpa [#allocation7], 0 }
   0xf   :  { %21 = vsyncpa [#allocation7 + $0x1], 0 }
  0x10   :  { %22 = vsyncpa [#allocation10], 0 }
  0x11   :  { %24 = vsyncpa [#allocation10 + $0x1], 0  ;;  %s1683_s11 = smov 0   ;;  %s1685_s12 = smov 0  }
  0x12   :  { %s1687_s13 = smov 0   ;;  %s1689_s14 = smov 0  }
  0x13 LB: > { %s1702_s0 = sadd.s32 4294967295, %s1580_s14   ;;  %s1705_s15 = sadd.s32 1, %s1580_s14   ;;  %s1580_s14 = sphi %s1689_s14, %s2161_s14   ;;  %s1576_s13 = sphi %s1687_s13, %s2160_s13   ;;  %s1572_s12 = sphi %s1685_s12, %s2159_s12   ;;  %s1568_s11 = sphi %s1683_s11, %s2158_s11  }
  0x14   : > { %s34_s16 = ssub.s32 %s1580_s14, %s1705_s15  ;;  %s37_s17 = sadd.s32 1, %s1576_s13 }
  0x15   : > { %p35_p3 = scmp.eq.s32.totalorder %s34_s16, 0  ;;  %p44_p4 = scmp.ne.s32.totalorder %s1576_s13, %s1572_s12 }
  0x16   : > { %p45_p5 = scmp.eq.s32.totalorder %s1580_s14, 0  ;;  %p50_p6 = scmp.ne.s32.totalorder %s1572_s12, %s1568_s11 }
  0x17   : > { %s1715_s18 = scalar_select %p35_p3, %s1576_s13, %s37_s17  }
  0x18   : > { %p1717_p7 = por %p45_p5, %p44_p4  ;;  %p51_p8 = scmp.eq.s32.totalorder %s1702_s0, 0 }
  0x19   : > { %p204_p9 = scmp.eq.s32.totalorder %s1702_s0, 1  ;;  %p1104_p12 = scmp.ge.s32.totalorder %s1580_s14, 2 }
  0x1a   : > { %p1723_p10 = por %p51_p8, %p50_p6 }
  0x1b   : > { %p1727_p11 = por %p204_p9, %p44_p4  ;;  %226 = sbr.rel (%p1104_p12) target bundleno = 209 (0xd1), region = 16 }
  0x1d   : > { %s2154_s21 = scalar_select %p1727_p11, 1, 0 }
  0x22   : > { %229 = sbr.rel (!%p1717_p7) target bundleno = 69 (0x45), region = 20  ;;  %s230_s22 = sand.u32 (%p1717_p7), 1, %s1576_s13  }
  0x23   : > { %s1106_s23 = sshll.u32 (%p1717_p7), %s1580_s14, 1  ;;  %s1105_s24 = sshll.u32 (%p1717_p7), %s230_s22, 3 }
  0x24   : > { %s236_s25 = ssub.s32 (%p1717_p7), 3, %s1106_s23  ;;  %s1739_s28 = scalar_lea.sflag (%p1717_p7), [#allocation5], %s230_s22 }
  0x25   : > { %p237_p13 = scmp.lt.s32.totalorder (%p1717_p7), %s236_s25, 2  ;;  %s234_s29 = scalar_lea.vmem (%p1717_p7), [#allocation4], %s1105_s24 }
  0x29   : > { %s2163_s25 = smov (!%p237_p13, %s236_s25), 2 }
  0x2a   : > { %s1736_s26 = sshll.u32 %s2163_s25, 6 }
  0x2b   : > { %s241_s27 = ssub.s32 128, %s1736_s26 }
  0x2c   : > { %242 = vsyncadd %s1739_s28, %s241_s27  ;;  %p1108_p0 = scmp.ne.s32.totalorder %s1736_s26, 0  ;;  %s1169_s30 = sshll.u32 %s1580_s14, 7 }
  0x2d   : > { %s1747_s10 = scalar_lea.hbm %s2145_s1, %s1169_s30  ;;  %s247_s11 = sshll.u32 %s234_s29, 4  ;;  %s1749_s11 = int_to_ptr.vmem [resolvable:$true] %s247_s11 }
  0x2e   : > { %s1364_s16 = scalar_lea.hbm %s1747_s10, %s1736_s26  ;;  %s1368_s23 = scalar_lea.hbm %s2145_s1, 192 }
  0x2f   : > { %p1365_p1 = scmp.ne.s32.totalorder %s1747_s10, %s1364_s16  ;;  %p1369_p4 = scmp.lt.u32.totalorder %s1747_s10, %s2145_s1 }
  0x30   : > { %p1370_p5 = scmp.lt.u32.totalorder %s1368_s23, %s1364_s16  ;;  %p1372_p8 = scmp.lt.u32.totalorder %s1364_s16, %s1747_s10 }
  0x31   : > { %p1366_p2 = pnand %p1365_p1, %p1108_p0 }
  0x32   : > { %p1371_p6 = por %p1370_p5, %p1369_p4 }
  0x33   : > { %p1367_p3 = pneg %p1366_p2 }
  0x34   : > { %p1373_p9 = por %p1372_p8, %p1371_p6 }
  0x36   : > { %p1374_p12 = pnand %p1373_p9, %p1367_p3 }
  0x38   : > { %1377 = shalt.err (!%p1374_p12)
}
  0x39   : > { %s1378_s27 = scalar_lea.vmem %s1749_s11, %s1736_s26  ;;  %s1615_s29 = smov [#allocation4]  }
  0x3a   : > { %p1379_p13 = scmp.ne.s32.totalorder %s1749_s11, %s1378_s27  ;;  %s1382_s30 = sshll.u32 %s1615_s29, 4  ;;  %s1383_s30 = int_to_ptr.vmem [resolvable:$false] %s1382_s30 }
  0x3b   : > { %s1384_s8 = scalar_lea.vmem %s1383_s30, 256  ;;  %p1385_p11 = scmp.lt.s32.totalorder %s1749_s11, %s1383_s30 }
  0x3c   : > { %p1380_p1 = pnand %p1379_p13, %p1108_p0  ;;  %p1386_p4 = scmp.lt.s32.totalorder %s1384_s8, %s1378_s27 }
  0x3e   : > { %p1381_p2 = pneg %p1380_p1  ;;  %p1387_p5 = por %p1386_p4, %p1385_p11 }
  0x40   : > { %p1388_p6 = pnand %p1387_p5, %p1381_p2 }
  0x42   : > { %1391 = shalt.err (!%p1388_p6)
}
  0x43   : > { %s1616_s9 = smov 64   ;;  %s1617_s16 = smov 4  }
  0x44   : > { %253 = dma.hbm_to_vmem [thread:$0]  (%p1108_p0), %s1747_s10, %s1736_s26, %s1749_s11, %s1739_s28, %s1616_s9, %s1616_s9, %s1617_s16  }
  0x45 PF: > { %256 = sbr.rel (!%p1717_p7) target bundleno = 104 (0x68), region = 24  ;;  %s257_s17 = sand.u32 (%p1717_p7), 1, %s1580_s14  }
  0x46   : > { %s259_s22 = sand.u32 (%p1717_p7), 1, %s1576_s13   ;;  %s1113_s24 = sshll.u32 (%p1717_p7), %s1580_s14, 1 }
  0x47   : > { %s1112_s23 = sshll.u32 (%p1717_p7), %s259_s22, 3  ;;  %s263_s25 = ssub.s32 (%p1717_p7), 3, %s1113_s24 }
  0x48   : > { %p264_p11 = scmp.lt.s32.totalorder (%p1717_p7), %s263_s25, 2  ;;  %s1784_s30 = scalar_lea.sflag (%p1717_p7), [#allocation7], %s257_s17 }
  0x49   : > { %s261_s26 = scalar_lea.vmem (%p1717_p7), [#allocation6], %s1112_s23 }
  0x4c   : > { %s2165_s25 = smov (!%p264_p11, %s263_s25), 2 }
  0x4d   : > { %s1781_s27 = sshll.u32 %s2165_s25, 6 }
  0x4e   : > { %s268_s29 = ssub.s32 128, %s1781_s27 }
  0x4f   : > { %269 = vsyncadd %s1784_s30, %s268_s29  ;;  %p1115_p0 = scmp.ne.s32.totalorder %s1781_s27, 0  ;;  %s1170_s28 = sshll.u32 %s1580_s14, 7 }
  0x50   : > { %s1792_s8 = scalar_lea.hbm %s2146_s2, %s1170_s28  ;;  %s274_s9 = sshll.u32 %s261_s26, 4  ;;  %s1794_s9 = int_to_ptr.vmem [resolvable:$true] %s274_s9 }
  0x51   : > { %s1392_s16 = scalar_lea.hbm %s1792_s8, %s1781_s27  ;;  %s1396_s23 = scalar_lea.hbm %s2146_s2, 192 }
  0x52   : > { %p1393_p3 = scmp.ne.s32.totalorder %s1792_s8, %s1392_s16  ;;  %p1397_p12 = scmp.lt.u32.totalorder %s1792_s8, %s2146_s2 }
  0x53   : > { %p1398_p13 = scmp.lt.u32.totalorder %s1396_s23, %s1392_s16  ;;  %p1400_p2 = scmp.lt.u32.totalorder %s1392_s16, %s1792_s8 }
  0x54   : > { %p1394_p8 = pnand %p1393_p3, %p1115_p0 }
  0x55   : > { %p1399_p1 = por %p1398_p13, %p1397_p12 }
  0x56   : > { %p1395_p9 = pneg %p1394_p8 }
  0x57   : > { %p1401_p4 = por %p1400_p2, %p1399_p1 }
  0x59   : > { %p1402_p5 = pnand %p1401_p4, %p1395_p9 }
  0x5b   : > { %1405 = shalt.err (!%p1402_p5)
}
  0x5c   : > { %s1406_s29 = scalar_lea.vmem %s1794_s9, %s1781_s27  ;;  %s1618_s26 = smov [#allocation6]  }
  0x5d   : > { %p1407_p6 = scmp.ne.s32.totalorder %s1794_s9, %s1406_s29  ;;  %s1410_s28 = sshll.u32 %s1618_s26, 4  ;;  %s1411_s28 = int_to_ptr.vmem [resolvable:$false] %s1410_s28 }
  0x5e   : > { %s1412_s10 = scalar_lea.vmem %s1411_s28, 256  ;;  %p1413_p8 = scmp.lt.s32.totalorder %s1794_s9, %s1411_s28 }
  0x5f   : > { %p1408_p11 = pnand %p1407_p6, %p1115_p0  ;;  %p1414_p12 = scmp.lt.s32.totalorder %s1412_s10, %s1406_s29 }
  0x61   : > { %p1409_p3 = pneg %p1408_p11  ;;  %p1415_p13 = por %p1414_p12, %p1413_p8 }
  0x63   : > { %p1416_p1 = pnand %p1415_p13, %p1409_p3 }
  0x65   : > { %1419 = shalt.err (!%p1416_p1)
}
  0x66   : > { %s1619_s11 = smov 64   ;;  %s1620_s16 = smov 4  }
  0x67   : > { %280 = dma.hbm_to_vmem [thread:$0]  (%p1115_p0), %s1792_s8, %s1781_s27, %s1794_s9, %s1784_s30, %s1619_s11, %s1619_s11, %s1620_s16  }
  0x68 PF: > { %283 = sbr.rel (!%p1717_p7) target bundleno = 139 (0x8b), region = 28  ;;  %s284_s17 = sand.u32 (%p1717_p7), 1, %s1580_s14  }
  0x69   : > { %s286_s22 = sand.u32 (%p1717_p7), 1, %s1576_s13   ;;  %s1120_s24 = sshll.u32 (%p1717_p7), %s1580_s14, 1 }
  0x6a   : > { %s1119_s23 = sshll.u32 (%p1717_p7), %s286_s22, 3  ;;  %s290_s25 = ssub.s32 (%p1717_p7), 3, %s1120_s24 }
  0x6b   : > { %p291_p9 = scmp.lt.s32.totalorder (%p1717_p7), %s290_s25, 2  ;;  %s1829_s28 = scalar_lea.sflag (%p1717_p7), [#allocation7], %s284_s17 }
  0x6c   : > { %s288_s27 = scalar_lea.vmem (%p1717_p7), [#allocation8], %s1119_s23 }
  0x6f   : > { %s2167_s25 = smov (!%p291_p9, %s290_s25), 2 }
  0x70   : > { %s1826_s29 = sshll.u32 %s2167_s25, 6 }
  0x71   : > { %s295_s26 = ssub.s32 128, %s1826_s29 }
  0x72   : > { %296 = vsyncadd %s1829_s28, %s295_s26  ;;  %p1122_p0 = scmp.ne.s32.totalorder %s1826_s29, 0  ;;  %s1171_s30 = sshll.u32 %s1580_s14, 7 }
  0x73   : > { %s1837_s10 = scalar_lea.hbm %s2147_s3, %s1171_s30  ;;  %s301_s11 = sshll.u32 %s288_s27, 4  ;;  %s1839_s11 = int_to_ptr.vmem [resolvable:$true] %s301_s11 }
  0x74   : > { %s1420_s16 = scalar_lea.hbm %s1837_s10, %s1826_s29  ;;  %s1424_s23 = scalar_lea.hbm %s2147_s3, 192 }
  0x75   : > { %p1421_p2 = scmp.ne.s32.totalorder %s1837_s10, %s1420_s16  ;;  %p1425_p6 = scmp.lt.u32.totalorder %s1837_s10, %s2147_s3 }
  0x76   : > { %p1426_p11 = scmp.lt.u32.totalorder %s1424_s23, %s1420_s16  ;;  %p1428_p8 = scmp.lt.u32.totalorder %s1420_s16, %s1837_s10 }
  0x77   : > { %p1422_p4 = pnand %p1421_p2, %p1122_p0 }
  0x78   : > { %p1427_p3 = por %p1426_p11, %p1425_p6 }
  0x79   : > { %p1423_p5 = pneg %p1422_p4 }
  0x7a   : > { %p1429_p12 = por %p1428_p8, %p1427_p3 }
  0x7c   : > { %p1430_p13 = pnand %p1429_p12, %p1423_p5 }
  0x7e   : > { %1433 = shalt.err (!%p1430_p13)
}
  0x7f   : > { %s1434_s26 = scalar_lea.vmem %s1839_s11, %s1826_s29  ;;  %s1621_s27 = smov [#allocation8]  }
  0x80   : > { %p1435_p1 = scmp.ne.s32.totalorder %s1839_s11, %s1434_s26  ;;  %s1438_s30 = sshll.u32 %s1621_s27, 4  ;;  %s1439_s30 = int_to_ptr.vmem [resolvable:$false] %s1438_s30 }
  0x81   : > { %s1440_s8 = scalar_lea.vmem %s1439_s30, 256  ;;  %p1441_p4 = scmp.lt.s32.totalorder %s1839_s11, %s1439_s30 }
  0x82   : > { %p1436_p9 = pnand %p1435_p1, %p1122_p0  ;;  %p1442_p6 = scmp.lt.s32.totalorder %s1440_s8, %s1434_s26 }
  0x84   : > { %p1437_p2 = pneg %p1436_p9  ;;  %p1443_p11 = por %p1442_p6, %p1441_p4 }
  0x86   : > { %p1444_p3 = pnand %p1443_p11, %p1437_p2 }
  0x88   : > { %1447 = shalt.err (!%p1444_p3)
}
  0x89   : > { %s1622_s9 = smov 64   ;;  %s1623_s16 = smov 4  }
  0x8a   : > { %307 = dma.hbm_to_vmem [thread:$0]  (%p1122_p0), %s1837_s10, %s1826_s29, %s1839_s11, %s1829_s28, %s1622_s9, %s1622_s9, %s1623_s16  }
  0x8b PF: > { %327 = sbr.rel (!%p1717_p7) target bundleno = 174 (0xae), region = 36  ;;  %s328_s17 = sand.u32 (%p1717_p7), 1, %s1580_s14  }
  0x8c   : > { %s330_s22 = sand.u32 (%p1717_p7), 1, %s1576_s13   ;;  %s1127_s24 = sshll.u32 (%p1717_p7), %s1580_s14, 1 }
  0x8d   : > { %s1126_s23 = sshll.u32 (%p1717_p7), %s330_s22, 3  ;;  %s334_s25 = ssub.s32 (%p1717_p7), 3, %s1127_s24 }
  0x8e   : > { %p335_p5 = scmp.lt.s32.totalorder (%p1717_p7), %s334_s25, 2  ;;  %s1874_s30 = scalar_lea.sflag (%p1717_p7), [#allocation10], %s328_s17 }
  0x8f   : > { %s332_s29 = scalar_lea.vmem (%p1717_p7), [#allocation9], %s1126_s23 }
  0x92   : > { %s2169_s25 = smov (!%p335_p5, %s334_s25), 2 }
  0x93   : > { %s1871_s26 = sshll.u32 %s2169_s25, 6 }
  0x94   : > { %s339_s27 = ssub.s32 128, %s1871_s26 }
  0x95   : > { %340 = vsyncadd %s1874_s30, %s339_s27  ;;  %p1129_p0 = scmp.ne.s32.totalorder %s1871_s26, 0  ;;  %s1172_s28 = sshll.u32 %s1580_s14, 7 }
  0x96   : > { %s1882_s8 = scalar_lea.hbm %s2149_s5, %s1172_s28  ;;  %s345_s9 = sshll.u32 %s332_s29, 4  ;;  %s1884_s9 = int_to_ptr.vmem [resolvable:$true] %s345_s9 }
  0x97   : > { %s1448_s16 = scalar_lea.hbm %s1882_s8, %s1871_s26  ;;  %s1452_s23 = scalar_lea.hbm %s2149_s5, 192 }
  0x98   : > { %p1449_p8 = scmp.ne.s32.totalorder %s1882_s8, %s1448_s16  ;;  %p1453_p1 = scmp.lt.u32.totalorder %s1882_s8, %s2149_s5 }
  0x99   : > { %p1454_p9 = scmp.lt.u32.totalorder %s1452_s23, %s1448_s16  ;;  %p1456_p4 = scmp.lt.u32.totalorder %s1448_s16, %s1882_s8 }
  0x9a   : > { %p1450_p12 = pnand %p1449_p8, %p1129_p0 }
  0x9b   : > { %p1455_p2 = por %p1454_p9, %p1453_p1 }
  0x9c   : > { %p1451_p13 = pneg %p1450_p12 }
  0x9d   : > { %p1457_p6 = por %p1456_p4, %p1455_p2 }
  0x9f   : > { %p1458_p11 = pnand %p1457_p6, %p1451_p13 }
  0xa1   : > { %1461 = shalt.err (!%p1458_p11)
}
  0xa2   : > { %s1462_s27 = scalar_lea.vmem %s1884_s9, %s1871_s26  ;;  %s1624_s29 = smov [#allocation9]  }
  0xa3   : > { %p1463_p3 = scmp.ne.s32.totalorder %s1884_s9, %s1462_s27  ;;  %s1466_s28 = sshll.u32 %s1624_s29, 4  ;;  %s1467_s28 = int_to_ptr.vmem [resolvable:$false] %s1466_s28 }
  0xa4   : > { %s1468_s10 = scalar_lea.vmem %s1467_s28, 256  ;;  %p1469_p12 = scmp.lt.s32.totalorder %s1884_s9, %s1467_s28 }
  0xa5   : > { %p1464_p5 = pnand %p1463_p3, %p1129_p0  ;;  %p1470_p1 = scmp.lt.s32.totalorder %s1468_s10, %s1462_s27 }
  0xa7   : > { %p1465_p8 = pneg %p1464_p5  ;;  %p1471_p9 = por %p1470_p1, %p1469_p12 }
  0xa9   : > { %p1472_p2 = pnand %p1471_p9, %p1465_p8 }
  0xab   : > { %1475 = shalt.err (!%p1472_p2)
}
  0xac   : > { %s1625_s11 = smov 64   ;;  %s1626_s16 = smov 4  }
  0xad   : > { %351 = dma.hbm_to_vmem [thread:$0]  (%p1129_p0), %s1882_s8, %s1871_s26, %s1884_s9, %s1874_s30, %s1625_s11, %s1625_s11, %s1626_s16  }
  0xae PF: > { %354 = sbr.rel (!%p1717_p7) target bundleno = 209 (0xd1), region = 40  ;;  %s355_s17 = sand.u32 (%p1717_p7), 1, %s1580_s14  }
  0xaf   : > { %s357_s22 = sand.u32 (%p1717_p7), 1, %s1576_s13   ;;  %s1134_s24 = sshll.u32 (%p1717_p7), %s1580_s14, 1 }
  0xb0   : > { %s1133_s23 = sshll.u32 (%p1717_p7), %s357_s22, 3  ;;  %s361_s25 = ssub.s32 (%p1717_p7), 3, %s1134_s24 }
  0xb1   : > { %p362_p13 = scmp.lt.s32.totalorder (%p1717_p7), %s361_s25, 2  ;;  %s1919_s28 = scalar_lea.sflag (%p1717_p7), [#allocation10], %s355_s17 }
  0xb2   : > { %s359_s26 = scalar_lea.vmem (%p1717_p7), [#allocation11], %s1133_s23 }
  0xb5   : > { %s2171_s25 = smov (!%p362_p13, %s361_s25), 2 }
  0xb6   : > { %s1916_s27 = sshll.u32 %s2171_s25, 6 }
  0xb7   : > { %s366_s29 = ssub.s32 128, %s1916_s27 }
  0xb8   : > { %367 = vsyncadd %s1919_s28, %s366_s29  ;;  %p1136_p7 = scmp.ne.s32.totalorder %s1916_s27, 0  ;;  %s1173_s19 = sshll.u32 %s1580_s14, 7 }
  0xb9   : > { %s1927_s9 = scalar_lea.hbm %s2150_s6, %s1173_s19  ;;  %s372_s10 = sshll.u32 %s359_s26, 4  ;;  %s1929_s10 = int_to_ptr.vmem [resolvable:$true] %s372_s10 }
  0xba   : > { %s1476_s11 = scalar_lea.hbm %s1927_s9, %s1916_s27  ;;  %s1480_s22 = scalar_lea.hbm %s2150_s6, 192 }
  0xbb   : > { %p1477_p0 = scmp.ne.s32.totalorder %s1927_s9, %s1476_s11  ;;  %p1481_p11 = scmp.lt.u32.totalorder %s1927_s9, %s2150_s6 }
  0xbc   : > { %p1482_p3 = scmp.lt.u32.totalorder %s1480_s22, %s1476_s11  ;;  %p1484_p8 = scmp.lt.u32.totalorder %s1476_s11, %s1927_s9 }
  0xbd   : > { %p1478_p4 = pnand %p1477_p0, %p1136_p7 }
  0xbe   : > { %p1483_p5 = por %p1482_p3, %p1481_p11 }
  0xbf   : > { %p1479_p6 = pneg %p1478_p4 }
  0xc0   : > { %p1485_p12 = por %p1484_p8, %p1483_p5 }
  0xc2   : > { %p1486_p1 = pnand %p1485_p12, %p1479_p6 }
  0xc4   : > { %1489 = shalt.err (!%p1486_p1)
}
  0xc5   : > { %s1490_s25 = scalar_lea.vmem %s1929_s10, %s1916_s27  ;;  %s1627_s29 = smov [#allocation11]  }
  0xc6   : > { %p1491_p9 = scmp.ne.s32.totalorder %s1929_s10, %s1490_s25  ;;  %s1494_s26 = sshll.u32 %s1627_s29, 4  ;;  %s1495_s26 = int_to_ptr.vmem [resolvable:$false] %s1494_s26 }
  0xc7   : > { %s1496_s19 = scalar_lea.vmem %s1495_s26, 256  ;;  %p1497_p0 = scmp.lt.s32.totalorder %s1929_s10, %s1495_s26 }
  0xc8   : > { %p1492_p2 = pnand %p1491_p9, %p1136_p7  ;;  %p1498_p4 = scmp.lt.s32.totalorder %s1496_s19, %s1490_s25 }
  0xca   : > { %p1493_p13 = pneg %p1492_p2  ;;  %p1499_p11 = por %p1498_p4, %p1497_p0 }
  0xcc   : > { %p1500_p3 = pnand %p1499_p11, %p1493_p13 }
  0xce   : > { %1503 = shalt.err (!%p1500_p3)
}
  0xcf   : > { %s1628_s30 = smov 64   ;;  %s1629_s8 = smov 4  }
  0xd0   : > { %378 = dma.hbm_to_vmem [thread:$0]  (%p1136_p7), %s1927_s9, %s1916_s27, %s1929_s10, %s1919_s28, %s1628_s30, %s1628_s30, %s1629_s8  }
  0xd1 PF: > { %p1140_p6 = scmp.ge.s32.totalorder %s1580_s14, 1  ;;  %p380_p5 = scmp.lt.s32.totalorder %s1580_s14, 3 }
  0xd3   : > { %p381_p8 = pnand %p1140_p6, %p380_p5 }
  0xd4   : > { %s1959_s11 = sand.u32 (!%p381_p8), 1, %s1572_s12  }
  0xd5   : > { %384 = sbr.rel (%p381_p8) target bundleno = 754 (0x2f2), region = 44  ;;  %s1962_s16 = sshll.u32 (!%p381_p8), %s1959_s11, 3 }
  0xd6   : > { %s387_s17 = scalar_lea.sflag (!%p381_p8), [#allocation5], %s1959_s11  ;;  %s390_s22 = scalar_lea.vmem (!%p381_p8), [#allocation4], %s1962_s16 }
  0xdc   : > { %1555 = dma.done.wait (%p1723_p10), %s387_s17, 128  }
  0xdd   : > { %1557 = vsyncadd (%p1723_p10), %s387_s17, 4294967168  ;;  %s395_s14 = sand.u32 1, %s1702_s0   ;;  %s399_s28 = scalar_lea.vmem [#allocation6], %s1962_s16 }
  0xde   : > { %s396_s27 = scalar_lea.sflag [#allocation7], %s395_s14 }
  0xdf   : > { %1559 = dma.done.wait (%p1723_p10), %s396_s27, 256  }
  0xe0   : > { %1561 = vsyncadd (%p1723_p10), %s396_s27, 4294967040  ;;  %s408_s9 = scalar_lea.vmem [#allocation8], %s1962_s16  ;;  %s414_s10 = scalar_lea.sflag [#allocation10], %s395_s14 }
  0xe1   : > { %s417_s23 = scalar_lea.vmem [#allocation9], %s1962_s16 }
  0xe2   : > { %1563 = dma.done.wait (%p1723_p10), %s414_s10, 256  }
  0xe3   : > { %1565 = vsyncadd (%p1723_p10), %s414_s10, 4294967040  ;;  %v1178_v0 = vld [vmem:[%s390_s22] sm:$0xff]   ;;  %v1198_v1 = vld [vmem:[%s399_s28] sm:$0xff]   ;;  %s2024_s20 = sshll.u32 %s1702_s0, 1  ;;  %s527_s24 = sld [smem:[#allocation3]]  ;;  %v1630_v62 = vmov 0.0  }
  0xe4   : > { %v1982_v2 = vunpack.c.l.bf16 %v1178_v0  ;;  %v1199_v3 = vunpack.c.l.bf16 %v1198_v1  ;;  %v1985_v4 = vunpack.c.h.bf16 %v1178_v0  ;;  %v1200_v5 = vunpack.c.h.bf16 %v1198_v1  ;;  %v1190_v24 = vld [vmem:[%s417_s23] sm:$0xff]   ;;  %p503_p10 = scmp.lt.s32.totalorder %s2024_s20, 2  ;;  %s426_s17 = scalar_lea.vmem [#allocation11], %s1962_s16 }
  0xe5   : > { %v2006_v25 = vunpack.c.h.bf16 %v1190_v24  ;;  %v2008_v26 = vunpack.c.l.bf16 %v1190_v24  ;;  %s1150_s16 = sld [smem:[#allocation3 + $0x2]]  ;;  %s1151_s22 = sld [smem:[#allocation3 + $0x3]] }
  0xe6   : > { %688 = vmax.xlane.f32.xlu0 %v1982_v2  ;;  %714 = vmax.xlane.f32.xlu1 %v1199_v3  ;;  %v535_v6 = vand.u32 2147483647, %v1982_v2  ;;  %v536_v7 = vand.u32 2147483647, %v1985_v4  ;;  %s504_s25 = scalar_select %p503_p10, %s2024_s20, 2 }
  0xe7   : > { %v633_v27 = vand.u32 2147483647, %v2006_v25  ;;  %v632_v28 = vand.u32 2147483647, %v2008_v26  ;;  %s1149_s14 = sld [smem:[#allocation3 + $0x1]]  ;;  %s1146_s28 = sshll.u32 %s1959_s11, 4 }
  0xe8   : > { %v537_v8 = vsub.f32 0.0, %v535_v6  ;;  %v538_v9 = vsub.f32 0.0, %v536_v7  ;;  %s1148_s29 = sshll.u32 %s504_s25, 2  ;;  %p2157_p7 = scmp.ne.s32.totalorder %s2154_s21, 0 }
  0xe9   : > { %v635_v29 = vsub.f32 0.0, %v633_v27  ;;  %v634_v30 = vsub.f32 0.0, %v632_v28  ;;  %s506_s30 = scalar_lea.vmem %s2148_s4, %s1148_s29  ;;  %s568_s8 = ssub.f32 0.0, %s527_s24  ;;  %v2040_v59 = vstv %s527_s24 }
  0xea   : > { %690 = vmax.xlane.f32.xlu0 %v1985_v4  ;;  %716 = vmax.xlane.f32.xlu1 %v1200_v5  ;;  %v539_v10 = vmul.f32 1.442695, %v537_v8  ;;  %v541_v15 = vmul.f32 1.442695, %v538_v9  ;;  %v1186_v47 = vld [vmem:[%s506_s30] sm:$0xff]   ;;  %s782_s11 = ssub.s32 (%p2157_p7), 3, %s2024_s20 }
  0xeb   : > { %v638_v33 = vmul.f32 1.442695, %v635_v29  ;;  %v636_v34 = vmul.f32 1.442695, %v634_v30  ;;  %v1188_v49 = vunpack.c.h.bf16 %v1186_v47  ;;  %v1187_v51 = vunpack.c.l.bf16 %v1186_v47  ;;  %s1174_s10 = sshll.u32 (%p2157_p7), %s1702_s0, 4  ;;  %p783_p12 = scmp.lt.s32.totalorder (%p2157_p7), %s782_s11, 2 }
  0xec   : > { %1314 = vpow2.f32 %v539_v10  ;;  %v2038_v54 = vstv %s568_s8  ;;  %s2107_s25 = scalar_lea.vmem (%p2157_p7), %s2151_s7, %s1174_s10  }
  0xed   : > { %vm599_vm1 = vcmp.gt.f32.partialorder %v1188_v49, %v2040_v59  ;;  %vm601_vm2 = vcmp.lt.f32.partialorder %v1188_v49, %v2038_v54  ;;  %v609_v60 = vmul.f32 %v1188_v49, %v1985_v4  ;;  %vm598_vm4 = vcmp.gt.f32.partialorder %v1187_v51, %v2040_v59  ;;  %s760_s27 = ssub.f32 1.0, %s1149_s14 }
  0xee   : > { %v603_v63 = vsel %vm601_vm2, -1.0, %v1630_v62  ;;  %vm600_vm5 = vcmp.lt.f32.partialorder %v1187_v51, %v2038_v54 }
  0xef   : > { %v602_v10 = vsel %vm600_vm5, -1.0, %v1630_v62 }
  0xf6   : > { %v1315_v31 = vpop.eup %1314 }
  0xf7   : > { %v543_v39 = vadd.f32 1.0, %v1315_v31  ;;  %v546_v45 = vmul.f32 -0.5, %v1315_v31  ;;  %v549_v55 = vand.u32 2147483647, %v1315_v31 }
  0xf9   : > { %v547_v50 = vadd.f32 1.0, %v546_v45  ;;  %vm550_vm3 = vcmp.lt.f32.partialorder %v549_v55, 0.0004427343 }
  0xfb   : > { %v548_v1 = vmul.f32 %v1315_v31, %v547_v50 }
 0x173   : > { %v689_v11 = vpop.xlane.xlu0 %688  ;;  %v715_v12 = vpop.xlane.xlu1 %714 }
 0x174   : > { %v1991_v13 = vsub.f32 %v1982_v2, %v689_v11  ;;  %v1993_v14 = vsub.f32 %v1199_v3, %v715_v12  ;;  %v1182_v3 = vld [vmem:[%s408_s9] sm:$0xff]   ;;  %v608_v11 = vmul.f32 %v1187_v51, %v1982_v2  ;;  %s2096_s9 = scalar_lea.vmem [#allocation12], %s1146_s28  }
 0x175   : > { %v1184_v12 = vunpack.c.h.bf16 %v1182_v3 }
 0x176   : > { %v694_v16 = vmul.f32 1.442695, %v1991_v13  ;;  %v720_v17 = vmul.f32 1.442695, %v1993_v14 }
 0x177   : > { %v691_v18 = vpop.xlane.xlu0 %690  ;;  %v717_v19 = vpop.xlane.xlu1 %716  ;;  %vm567_vm6 = vcmp.gt.f32.partialorder %v1184_v12, %v2040_v59  ;;  %vm571_vm7 = vcmp.lt.f32.partialorder %v1184_v12, %v2038_v54  ;;  %v579_v30 = vmul.f32 %v1184_v12, %v1985_v4 }
 0x178   : > { %1316 = vpow2.f32 %v694_v16  ;;  %v1998_v20 = vsub.f32 %v1985_v4, %v691_v18  ;;  %v2000_v21 = vsub.f32 %v1200_v5, %v717_v19  ;;  %v605_v5 = vsel %vm599_vm1, 1.0, %v603_v63  ;;  %v1194_v16 = vld [vmem:[%s426_s17] sm:$0xff]  }
 0x179   : > { %1318 = vpow2.f32 %v541_v15  ;;  %v607_v7 = vand.u32 2147483647, %v605_v5  ;;  %v615_v8 = vmul.f32 %v1985_v4, %v605_v5  ;;  %v1183_v15 = vunpack.c.l.bf16 %v1182_v3 }
 0x17a   : > { %1320 = vpow2.f32 %v720_v17  ;;  %v696_v22 = vmul.f32 1.442695, %v1998_v20  ;;  %v722_v23 = vmul.f32 1.442695, %v2000_v21  ;;  %v604_v19 = vsel %vm598_vm4, 1.0, %v602_v10 }
 0x17b   : > { %v617_v18 = vmax.f32 %v615_v8, 0.0  ;;  %v606_v24 = vand.u32 2147483647, %v604_v19  ;;  %v614_v28 = vmul.f32 %v1982_v2, %v604_v19  ;;  %vm566_vm8 = vcmp.gt.f32.partialorder %v1183_v15, %v2040_v59 }
 0x17c   : > { %1322 = vpow2.f32 %v696_v22  ;;  %v1196_v22 = vunpack.c.h.bf16 %v1194_v16  ;;  %vm570_vm9 = vcmp.lt.f32.partialorder %v1183_v15, %v2038_v54  ;;  %v1195_v5 = vunpack.c.l.bf16 %v1194_v16 }
 0x17d   : > { %1324 = vpow2.f32 %v722_v23 }
 0x17e   : > { %1326 = vpow2.f32 %v638_v33  ;;  %vm659_vm10 = vcmp.gt.f32.partialorder %v1196_v22, %v2040_v59  ;;  %vm661_vm11 = vcmp.lt.f32.partialorder %v1196_v22, %v2038_v54  ;;  %v669_v3 = vmul.f32 %v1196_v22, %v2006_v25 }
 0x17f   : > { %1328 = vpow2.f32 %v636_v34  ;;  %v616_v34 = vmax.f32 %v614_v28, 0.0  ;;  %vm658_vm13 = vcmp.gt.f32.partialorder %v1195_v5, %v2040_v59  ;;  %vm660_vm14 = vcmp.lt.f32.partialorder %v1195_v5, %v2038_v54 }
 0x182   : > { %v2012_v32 = vpop.eup %1316 }
 0x183   : > { %v1319_v35 = vpop.eup %1318  ;;  %698 = vadd.xlane.f32.xlu0 %v2012_v32 }
 0x184   : > { %v2015_v36 = vpop.eup %1320  ;;  %v552_v38 = vadd.f32 1.0, %v1319_v35  ;;  %v555_v44 = vmul.f32 -0.5, %v1319_v35  ;;  %v558_v53 = vand.u32 2147483647, %v1319_v35 }
 0x186   : > { %v2017_v37 = vpop.eup %1322  ;;  %1330 = vlog2.f32 %v552_v38  ;;  %v556_v48 = vadd.f32 1.0, %v555_v44  ;;  %vm559_vm0 = vcmp.lt.f32.partialorder %v558_v53, 0.0004427343  ;;  %v578_v44 = vmul.f32 %v1183_v15, %v1982_v2 }
 0x187   : > { %724 = vadd.xlane.f32.xlu0 %v2015_v36  ;;  %700 = vadd.xlane.f32.xlu1 %v2017_v37  ;;  %v2021_v40 = vpop.eup %1324  ;;  %1332 = vlog2.f32 %v543_v39  ;;  %v662_v15 = vsel %vm660_vm14, -1.0, %v1630_v62 }
 0x188   : > { %v2029_v41 = vpop.eup %1326  ;;  %v557_v58 = vmul.f32 %v1319_v35, %v556_v48  ;;  %v573_v35 = vsel %vm571_vm7, -1.0, %v1630_v62 }
 0x189   : > { %v2031_v42 = vpop.eup %1328  ;;  %v649_v43 = vadd.f32 1.0, %v2029_v41  ;;  %v575_v38 = vsel %vm567_vm6, 1.0, %v573_v35 }
 0x18a   : > { %v640_v46 = vadd.f32 1.0, %v2031_v42  ;;  %v585_v47 = vmul.f32 %v1985_v4, %v575_v38  ;;  %v646_v10 = vand.u32 2147483647, %v2031_v42 }
 0x18b   : > { %726 = vadd.xlane.f32.xlu1 %v2021_v40  ;;  %1334 = vlog2.f32 %v649_v43  ;;  %v572_v43 = vsel %vm570_vm9, -1.0, %v1630_v62 }
 0x18c   : > { %1336 = vlog2.f32 %v640_v46  ;;  %v577_v46 = vand.u32 2147483647, %v575_v38  ;;  %v574_v48 = vsel %vm566_vm8, 1.0, %v572_v43  ;;  %v587_v55 = vmax.f32 %v585_v47, 0.0 }
 0x18d   : > { %v576_v49 = vand.u32 2147483647, %v574_v48  ;;  %v584_v51 = vmul.f32 %v1982_v2, %v574_v48  ;;  %v663_v2 = vsel %vm661_vm11, -1.0, %v1630_v62  ;;  %vm647_vm15 = vcmp.lt.f32.partialorder %v646_v10, 0.0004427343 }
 0x18e   : > { %v761_v10 = vstv %s760_s27 }
 0x190   : > { %v1331_v52 = vpop.eup %1330 }
 0x191   : > { %v1333_v56 = vpop.eup %1332  ;;  %v554_v57 = vmul.f32 0.6931472, %v1331_v52 }
 0x192   : > { %v545_v0 = vmul.f32 0.6931472, %v1333_v56  ;;  %v652_v56 = vmul.f32 -0.5, %v2029_v41 }
 0x193   : > { %v560_v61 = vsel %vm559_vm0, %v557_v58, %v554_v57  ;;  %v655_v57 = vand.u32 2147483647, %v2029_v41  ;;  %vm771_vm0 = vcmask 7168  }
 0x194   : > { %v611_v6 = vsub.f32 %v560_v61, %v609_v60  ;;  %v551_v9 = vsel %vm550_vm3, %v548_v1, %v545_v0  ;;  %v581_v39 = vsub.f32 %v560_v61, %v579_v30  ;;  %v586_v60 = vmax.f32 %v584_v51, 0.0 }
 0x195   : > { %v1335_v23 = vpop.eup %1334  ;;  %v610_v27 = vsub.f32 %v551_v9, %v608_v11  ;;  %v580_v50 = vsub.f32 %v551_v9, %v578_v44  ;;  %v653_v61 = vadd.f32 1.0, %v652_v56  ;;  %vm2069_vm12 = vcmp.lt.f32.partialorder %v655_v57, 0.0004427343 }
 0x196   : > { %v613_v17 = vmul.f32 %v611_v6, %v607_v7  ;;  %v1337_v31 = vpop.eup %1336  ;;  %v651_v52 = vmul.f32 0.6931472, %v1335_v23  ;;  %v583_v53 = vmul.f32 %v581_v39, %v577_v46  ;;  %v665_v1 = vsel %vm659_vm10, 1.0, %v663_v2 }
 0x197   : > { %v612_v33 = vmul.f32 %v610_v27, %v606_v24  ;;  %v582_v58 = vmul.f32 %v580_v50, %v576_v49  ;;  %v654_v6 = vmul.f32 %v2029_v41, %v653_v61  ;;  %v667_v7 = vand.u32 2147483647, %v665_v1 }
 0x198   : > { %v619_v29 = vadd.f32 %v617_v18, %v613_v17  ;;  %v589_v4 = vadd.f32 %v587_v55, %v583_v53  ;;  %v675_v8 = vmul.f32 %v2006_v25, %v665_v1  ;;  %v643_v9 = vmul.f32 -0.5, %v2031_v42 }
 0x199   : > { %v618_v45 = vadd.f32 %v616_v34, %v612_v33  ;;  %v588_v0 = vadd.f32 %v586_v60, %v582_v58  ;;  %v657_v11 = vsel %vm2069_vm12, %v654_v6, %v651_v52  ;;  %v642_v12 = vmul.f32 0.6931472, %v1337_v31 }
 0x19a   : > { %622 = vadd.xlane.f32.xlu1 %v619_v29  ;;  %v671_v16 = vsub.f32 %v657_v11, %v669_v3  ;;  %v677_v41 = vmax.f32 %v675_v8, 0.0  ;;  %v644_v17 = vadd.f32 1.0, %v643_v9  ;;  %v664_v18 = vsel %vm658_vm13, 1.0, %v662_v15 }
 0x19b   : > { %620 = vadd.xlane.f32.xlu0 %v618_v45  ;;  %v668_v25 = vmul.f32 %v1195_v5, %v2008_v26  ;;  %v674_v19 = vmul.f32 %v2008_v26, %v664_v18  ;;  %v666_v23 = vand.u32 2147483647, %v664_v18  ;;  %v755_v1 = vstv %s1151_s22 }
 0x19c   : > { %v673_v22 = vmul.f32 %v671_v16, %v667_v7  ;;  %v645_v59 = vmul.f32 %v2031_v42, %v644_v17  ;;  %v764_v11 = vstv %s1149_s14 }
 0x19d   : > { %v676_v28 = vmax.f32 %v674_v19, 0.0 }
 0x19e   : > { %592 = vadd.xlane.f32.xlu1 %v589_v4  ;;  %v679_v54 = vadd.f32 %v677_v41, %v673_v22  ;;  %v648_v24 = vsel %vm647_vm15, %v645_v59, %v642_v12 }
 0x19f   : > { %590 = vadd.xlane.f32.xlu0 %v588_v0  ;;  %v670_v27 = vsub.f32 %v648_v24, %v668_v25 }
 0x1a1   : > { %v672_v29 = vmul.f32 %v670_v27, %v666_v23 }
 0x1a2   : > { %682 = vadd.xlane.f32.xlu1 %v679_v54 }
 0x1a3   : > { %v678_v62 = vadd.f32 %v676_v28, %v672_v29 }
 0x1a5   : > { %680 = vadd.xlane.f32.xlu0 %v678_v62 }
 0x210   : > { %v699_v30 = vpop.xlane.xlu0 %698 }
 0x211   : > { %1338 = vlog2.f32 %v699_v30 }
 0x212   : > { %1340 = vrcp.f32 %v699_v30 }
 0x214   : > { %v701_v31 = vpop.xlane.xlu1 %700  ;;  %v725_v33 = vpop.xlane.xlu0 %724 }
 0x215   : > { %1342 = vlog2.f32 %v701_v31 }
 0x216   : > { %1344 = vrcp.f32 %v701_v31 }
 0x217   : > { %1346 = vlog2.f32 %v725_v33 }
 0x218   : > { %1348 = vrcp.f32 %v725_v33  ;;  %v727_v26 = vpop.xlane.xlu1 %726 }
 0x219   : > { %1350 = vlog2.f32 %v727_v26 }
 0x21a   : > { %1352 = vrcp.f32 %v727_v26 }
 0x21b   : > { %v1339_v42 = vpop.eup %1338 }
 0x21c   : > { %v1341_v34 = vpop.eup %1340  ;;  %v703_v39 = vmul.f32 0.6931472, %v1339_v42 }
 0x21d   : > { %v712_v52 = vmul.f32 %v1341_v34, %v2012_v32 }
 0x21e   : > { %v706_v51 = vsub.f32 %v1991_v13, %v703_v39 }
 0x21f   : > { %v1343_v35 = vpop.eup %1342 }
 0x220   : > { %v1345_v38 = vpop.eup %1344  ;;  %v705_v45 = vmul.f32 0.6931472, %v1343_v35 }
 0x221   : > { %v1347_v43 = vpop.eup %1346  ;;  %v713_v55 = vmul.f32 %v1345_v38, %v2017_v37  ;;  %v750_v37 = vstv %s1150_s16 }
 0x222   : > { %v1349_v44 = vpop.eup %1348  ;;  %v729_v46 = vmul.f32 0.6931472, %v1347_v43  ;;  %v707_v60 = vsub.f32 %v1998_v20, %v705_v45 }
 0x223   : > { %v1351_v47 = vpop.eup %1350  ;;  %v738_v48 = vmul.f32 %v1349_v44, %v2015_v36 }
 0x224   : > { %v1353_v49 = vpop.eup %1352  ;;  %v731_v50 = vmul.f32 0.6931472, %v1351_v47  ;;  %v732_v53 = vsub.f32 %v1993_v14, %v729_v46 }
 0x225   : > { %v739_v56 = vmul.f32 %v1353_v49, %v2021_v40  ;;  %v740_v57 = vsub.f32 %v712_v52, %v738_v48 }
 0x226   : > { %v742_v58 = vsub.f32 %v706_v51, %v732_v53  ;;  %v733_v4 = vsub.f32 %v2000_v21, %v731_v50 }
 0x227   : > { %v741_v36 = vsub.f32 %v713_v55, %v739_v56  ;;  %v623_v32 = vpop.xlane.xlu1 %622 }
 0x228   : > { %v744_v61 = vmul.f32 %v742_v58, %v740_v57  ;;  %v743_v63 = vsub.f32 %v707_v60, %v733_v4  ;;  %v621_v13 = vpop.xlane.xlu0 %620  ;;  %v752_v3 = vmul.f32 %v750_v37, %v623_v32 }
 0x229   : > { %v751_v40 = vmul.f32 %v750_v37, %v621_v13 }
 0x22a   : > { %746 = vadd.xlane.f32.xlu0 %v744_v61  ;;  %v745_v2 = vmul.f32 %v743_v63, %v741_v36 }
 0x22b   : > { %v593_v0 = vpop.xlane.xlu1 %592 }
 0x22c   : > { %748 = vadd.xlane.f32.xlu1 %v745_v2  ;;  %v591_v14 = vpop.xlane.xlu0 %590  ;;  %v754_v7 = vadd.f32 %v752_v3, %v593_v0 }
 0x22d   : > { %v753_v5 = vadd.f32 %v751_v40, %v591_v14 }
 0x22f   : > { %v683_v21 = vpop.xlane.xlu1 %682 }
 0x230   : > { %v757_v8 = vmul.f32 %v755_v1, %v683_v21 }
 0x232   : > { %v681_v20 = vpop.xlane.xlu0 %680  ;;  %v759_v12 = vadd.f32 %v757_v8, %v754_v7 }
 0x233   : > { %v756_v6 = vmul.f32 %v755_v1, %v681_v20 }
 0x234   : > { %v763_v25 = vmul.f32 %v761_v10, %v759_v12 }
 0x235   : > { %v758_v9 = vadd.f32 %v756_v6, %v753_v5 }
 0x237   : > { %v762_v16 = vmul.f32 %v761_v10, %v758_v9 }
 0x2b7   : > { %v747_v15 = vpop.xlane.xlu0 %746 }
 0x2b8   : > { %v765_v41 = vmul.f32 %v764_v11, %v747_v15 }
 0x2b9   : > { %v749_v17 = vpop.xlane.xlu1 %748 }
 0x2ba   : > { %v767_v18 = vadd.f32 %v765_v41, %v762_v16  ;;  %v766_v19 = vmul.f32 %v764_v11, %v749_v17  ;;  %780 = sbr.rel (!%p2157_p7) target bundleno = 754 (0x2f2), region = 68 }
 0x2bc   : > { %v769_v22 = vmul.f32 0.0078125, %v767_v18  ;;  %v768_v59 = vadd.f32 %v766_v19, %v763_v25 }
 0x2be   : > { %772 = vst.msk [vmem:[%s2096_s9] sm:$0xff] %vm771_vm0, %v769_v22  ;;  %v770_v23 = vmul.f32 0.0078125, %v768_v59 }
 0x2c0   : > { %773 = vst.msk [vmem:[%s2096_s9 + $0x8] sm:$0xff] %vm771_vm0, %v770_v23 }
 0x2c1   : > { %s2173_s11 = smov (!%p783_p12, %s782_s11), 2 }
 0x2c2   : > { %s1154_s29 = sshll.u32 %s2173_s11, 7 }
 0x2c3   : > { %p1157_p1 = scmp.eq.s32.totalorder %s1154_s29, 0 }
 0x2c4   : > { %s2113_s26 = sshrl.u32 (!%p1157_p1), %s2173_s11, 1 }
 0x2c5   : > { %791 = sbr.rel (%p1157_p1) target bundleno = 754 (0x2f2), region = 72  ;;  %p1158_p9 = scmp.le.s32.totalorder (!%p1157_p1), %s2113_s26, 0 }
 0x2cc   : > { %1013 = sbr.rel (%p1158_p9) target bundleno = 733 (0x2dd), region = 189  ;;  %s1582_s0 = smov (!%p1158_p9), %s2107_s25  }
 0x2cd   : > { %s1586_s21 = smov (!%p1158_p9), %s2096_s9   ;;  %s1590_s20 = smov (!%p1158_p9), 0  }
 0x2ce   : > { %s1594_s19 = smov (!%p1158_p9), 0  }
 0x2d3 LB: >> { %v855_v54 = vld [vmem:[%s1588_s21] sm:$0xff]  ;;  %v857_v24 = vld [vmem:[%s1588_s21 + $0x8] sm:$0xff]  ;;  %s859_s30 = sadd.s32 1, %s1592_s20  ;;  %s849_s19 = sadd.s32 1, %s1596_s19   ;;  %s1596_s19 = sphi %s1594_s19, %s849_s19   ;;  %s1592_s20 = sphi %s1590_s20, %s1591_s20   ;;  %s1588_s21 = sphi %s1586_s21, %s864_s21   ;;  %s1584_s0 = sphi %s1582_s0, %s865_s0  }
 0x2d4   : >> { %856 = vst [vmem:[%s1584_s0] sm:$0xff] %v855_v54  ;;  %858 = vst [vmem:[%s1584_s0 + $0x8] sm:$0xff] %v857_v24  ;;  %p860_p2 = scmp.ge.s32.totalorder %s859_s30, %s2113_s26  ;;  %p848_p13 = scmp.ge.s32.totalorder %s849_s19, %s2113_s26 }
 0x2d6   : >> { %s2175_s30 = smov (%p860_p2, %s859_s30), 0  ;;  %851 = sbr.rel (!%p848_p13) target bundleno = 723 (0x2d3), region = 195 }
 0x2d7   : >> { %s1159_s8 = sshll.u32 %s2175_s30, 4  ;;  %s1591_s20 = smov %s2175_s30  }
 0x2d8   : >> { %s864_s21 = scalar_lea.vmem %s2096_s9, %s1159_s8 [#allocation12]   ;;  %s865_s0 = scalar_lea.vmem %s2107_s25, %s1159_s8  }
 0x2dd PF: > { %s2123_s17 = sand.u32 1, %s2173_s11   ;;  %s1175_s16 = sshll.u32 %s2113_s26, 4 }
 0x2de   : > { %s870_s22 = scalar_lea.vmem %s2096_s9, %s1175_s16 [#allocation12]   ;;  %s872_s14 = scalar_lea.vmem %s2107_s25, %s1175_s16  }
 0x2df   : > { %p1164_p0 = scmp.le.s32.totalorder %s2123_s17, 0 }
 0x2e0   : > { %s1598_s27 = smov (!%p1164_p0), %s872_s14   ;;  %s1602_s28 = smov (!%p1164_p0), %s870_s22  }
 0x2e1   : > { %1027 = sbr.rel (%p1164_p0) target bundleno = 754 (0x2f2), region = 200  ;;  %s1606_s10 = smov (!%p1164_p0), 0  }
 0x2e2   : > { %s1610_s23 = smov (!%p1164_p0), 0  }
 0x2e8 LB: >> { %v882_v27 = vld [vmem:[%s1604_s28] sm:$0xff]  ;;  %s884_s11 = sadd.s32 1, %s1608_s10  ;;  %s876_s23 = sadd.s32 1, %s1612_s23   ;;  %s1612_s23 = sphi %s1610_s23, %s876_s23   ;;  %s1608_s10 = sphi %s1606_s10, %s1607_s10   ;;  %s1604_s28 = sphi %s1602_s28, %s889_s28   ;;  %s1600_s27 = sphi %s1598_s27, %s890_s27  }
 0x2e9   : >> { %883 = vst [vmem:[%s1600_s27] sm:$0xff] %v882_v27  ;;  %p885_p4 = scmp.ge.s32.totalorder %s884_s11, %s2123_s17  ;;  %p875_p11 = scmp.ge.s32.totalorder %s876_s23, %s2123_s17 }
 0x2eb   : >> { %s2177_s11 = smov (%p885_p4, %s884_s11), 0  ;;  %878 = sbr.rel (!%p875_p11) target bundleno = 744 (0x2e8), region = 206 }
 0x2ec   : >> { %s1165_s9 = sshll.u32 %s2177_s11, 3  ;;  %s1607_s10 = smov %s2177_s11  }
 0x2ed   : >> { %s889_s28 = scalar_lea.vmem %s870_s22, %s1165_s9 [#allocation12]   ;;  %s890_s27 = scalar_lea.vmem %s872_s14, %s1165_s9  }
 0x2f2 PF: > { %p27_p3 = scmp.ge.s32.totalorder %s1705_s15, 4   ;;  %s2158_s11 = smov %s1572_s12 }
 0x2f3   : > { %s2159_s12 = smov %s1576_s13  ;;  %s2160_s13 = smov %s1715_s18 }
 0x2f4   : > { %s2161_s14 = smov %s1705_s15  ;;  %29 = sbr.rel (!%p27_p3) target bundleno = 19 (0x13), region = 217 }
 0x2fb   :  { %906 = vsyncpa [#allocation5], 1 }
 0x2fc   :  { %908 = vsyncpa [#allocation5 + $0x1], 1 }
 0x2fd   :  { %909 = vsyncpa [#allocation7], 1 }
 0x2fe   :  { %911 = vsyncpa [#allocation7 + $0x1], 1 }
 0x2ff   :  { %912 = vsyncpa [#allocation10], 1 }
 0x300   :  { %914 = vsyncpa [#allocation10 + $0x1], 1 }

</bundles_post_ra>
